<compile_context>
chip_gen: v7x
topology: tpu7x:2x2x1
jax: 0.10.0
libtpu: 0.0.40
codegen_flags: <defaults>
</compile_context>

<pallas_src>
import jax
import jax.numpy as jnp
import numpy as np
from jax.experimental import pallas as pl
from jax.experimental.pallas import tpu as pltpu

SIGMA_EPS = 1e-4


def _soft_quantize_kernel(x_ref, cT2s_ref, nb_ref, c_ref, out_ref):
    # x_ref:   (TN, m)  natural layout block of x.reshape(N, m)
    # cT2s_ref:(L, m)   2*sigma*c.T        (grid-invariant)
    # nb_ref:  (L, 1)   -sigma*||c||^2     (grid-invariant)
    # c_ref:   (m, L)   c                  (grid-invariant)
    # out_ref: (TN, m)  natural layout block of out.reshape(N, m)
    xT = x_ref[...].T                                        # (m, TN) on-chip XLU transpose
    # logits[l, n] = 2*sigma * sum_m c[m,l]*x[n,m]  -  sigma*||c[:,l]||^2
    # (the -sigma*||x[n]||^2 term is constant over l and cancels in softmax)
    logits = jnp.dot(cT2s_ref[...], xT,
                     preferred_element_type=jnp.float32,
                     precision=jax.lax.Precision.HIGHEST) + nb_ref[...]   # (L, TN)
    mx = jnp.max(logits, axis=0, keepdims=True)              # (1, TN)
    p = jnp.exp(logits - mx)                                 # (L, TN) softmax numerator
    # Exact f32 normalization (the approx reciprocal broke the 1e-3 check).
    inv = 1.0 / jnp.sum(p, axis=0, keepdims=True)            # (1, TN)
    acc = jnp.dot(c_ref[...], p,
                  preferred_element_type=jnp.float32,
                  precision=jax.lax.Precision.HIGHEST)       # (m, TN)
    out_ref[...] = ((acc * inv).T).astype(out_ref.dtype)     # store natural layout (TN, m)


def _round_up(x, n):
    return (x + n - 1) // n * n


def soft_quantize(x, c, sigma, *, m, tile_n=None):
    """x: (b, r) f32, c: (m, L) f32, sigma: scalar f32 (sigma_trainable path)."""
    b, r = x.shape
    n_features = r // m
    L = c.shape[1]
    N = b * n_features

    # Free, contiguous reshape: no HBM copy, no transpose, no pad.
    x2 = x.reshape(N, m)

    if tile_n is None:
        cap = 4096  # natural-layout (tile_n, m) buffers pad lanes 16x; keep footprint modest
        steps = max(2, 2 * pl.cdiv(pl.cdiv(N, cap), 2))      # even step count (v7x: 2 TCs)
        tile_n = max(128, min(cap, _round_up(pl.cdiv(N, steps), 128)))
    grid_n = pl.cdiv(N, tile_n)   # ragged last block is masked by Pallas; columns are independent

    # Hoisted c-side constants with sigma = relu(sigma) + eps folded in.
    sig = jnp.maximum(jnp.asarray(sigma, jnp.float32), 0.0) + SIGMA_EPS
    cT2s = (2.0 * sig) * c.T                                  # (L, m)
    nb = (-sig) * jnp.sum(c * c, axis=0, keepdims=True).T     # (L, 1)

    out2 = pl.pallas_call(
        _soft_quantize_kernel,
        out_shape=jax.ShapeDtypeStruct((N, m), jnp.float32),
        grid=(grid_n,),
        in_specs=[
            pl.BlockSpec((tile_n, m), lambda i: (i, 0)),      # x block, natural layout
            pl.BlockSpec((L, m), lambda i: (0, 0)),           # 2*sigma*c.T   (resident)
            pl.BlockSpec((L, 1), lambda i: (0, 0)),           # -sigma*||c||^2 (resident)
            pl.BlockSpec((m, L), lambda i: (0, 0)),           # c             (resident)
        ],
        out_specs=pl.BlockSpec((tile_n, m), lambda i: (i, 0)),
        compiler_params=pltpu.CompilerParams(
            dimension_semantics=("parallel",),
            vmem_limit_bytes=32 * 1024 * 1024,
        ),
    )(x2, cT2s, nb, c)

    # Free reshape back to the module's (b, r) output layout.
    return out2.reshape(b, r)


def _reference(x, c, sigma, *, m):
    # Pure-JAX reference mirroring the PyTorch forward (quant_mode=1).
    b, r = x.shape
    n_features = r // m
    L = c.shape[1]
    z = x.reshape(b, n_features, m, 1)                  # (b, nf, m, 1)
    cc = c.reshape(1, 1, m, L)                          # (1, 1, m, L)
    s = jnp.maximum(jnp.asarray(sigma, jnp.float32), 0.0) + SIGMA_EPS
    d = jnp.sum((z - cc) ** 2, axis=2)                  # (b, nf, L)
    q = jax.nn.softmax(-s * d, axis=2)                  # (b, nf, L)
    out = jnp.einsum("bfl,ml->bfm", q, c,
                     precision=jax.lax.Precision.HIGHEST)  # (b, nf, m)
    return out.reshape(b, r)


if __name__ == "__main__":
    # Module hyperparameters (small, consistent with __init__ semantics).
    m = 8                 # dimensionality of cluster centers
    n_features = 4
    r = n_features * m    # latent dim = 32
    L = 16                # number of cluster centers
    b = 64                # batch -> N = b * n_features = 256 -> 2 lane-dense grid steps

    key = jax.random.PRNGKey(0)
    kx, kc = jax.random.split(key)
    x = jax.random.normal(kx, (b, r), dtype=jnp.float32)
    # init_centers(c): c is (m, L), deterministic synthetic init.
    c = 0.5 * jax.random.normal(kc, (m, L), dtype=jnp.float32)
    sigma = 1.0           # sigma parameter (sigma_trainable path: relu(sigma)+eps)

    out = soft_quantize(x, c, sigma, m=m)
    out = jax.block_until_ready(out)

    ref = _reference(x, c, sigma, m=m)
    assert out.shape == (b, r)
    # With exact f32 normalization and HIGHEST-precision dots, the observed
    # error floor is ~1e-6; 1e-4 gives a comfortable margin.
    np.testing.assert_allclose(np.asarray(out), np.asarray(ref), rtol=1e-4, atol=1e-4)

    print("KERNEL_OK")
</pallas_src>

<mosaic_0001>
module attributes {stable_mosaic.version = 11 : i64} {
  func.func @_soft_quantize_kernel(%arg0: i32, %arg1: memref<128x8xf32, #tpu.memory_space<vmem>>, %arg2: memref<16x8xf32, #tpu.memory_space<vmem>>, %arg3: memref<16x1xf32, #tpu.memory_space<vmem>>, %arg4: memref<8x16xf32, #tpu.memory_space<vmem>>, %arg5: memref<128x8xf32, #tpu.memory_space<vmem>>) attributes {dimension_semantics = [#tpu.dimension_semantics<parallel>], iteration_bounds = array<i64: 2>, scalar_prefetch = 0 : i64, scratch_operands = 0 : i64, tpu.core_type = #tpu.core_type<tc>, window_params = [{transform_indices = @transform_0, window_bounds = array<i64: 128, 8>}, {pipeline_mode = #tpu.pipeline_mode<synchronous>, transform_indices = @transform_1, window_bounds = array<i64: 16, 8>}, {pipeline_mode = #tpu.pipeline_mode<synchronous>, transform_indices = @transform_2, window_bounds = array<i64: 16, 1>}, {pipeline_mode = #tpu.pipeline_mode<synchronous>, transform_indices = @transform_3, window_bounds = array<i64: 8, 16>}, {transform_indices = @transform_4, window_bounds = array<i64: 128, 8>}]} {
    %c0 = arith.constant 0 : index
    %c0_0 = arith.constant 0 : index
    %0 = vector.load %arg1[%c0, %c0_0] : memref<128x8xf32, #tpu.memory_space<vmem>>, vector<128x8xf32>
    %1 = tpu.transpose %0, [1, 0] : vector<128x8xf32> -> vector<8x128xf32>
    %c0_1 = arith.constant 0 : index
    %c0_2 = arith.constant 0 : index
    %2 = vector.load %arg2[%c0_1, %c0_2] : memref<16x8xf32, #tpu.memory_space<vmem>>, vector<16x8xf32>
    %cst = arith.constant dense<0.000000e+00> : vector<16x128xf32>
    %3 = tpu.matmul %2, %1, %cst {dimension_numbers = #tpu.dot_dimension_numbers<[1], [0], [0], [1], [0, 0, 1, 1], [], []>, precision = #tpu.contract_precision<fp32>} : vector<16x8xf32>, vector<8x128xf32>, vector<16x128xf32> -> vector<16x128xf32>
    %c0_3 = arith.constant 0 : index
    %c0_4 = arith.constant 0 : index
    %4 = vector.load %arg3[%c0_3, %c0_4] : memref<16x1xf32, #tpu.memory_space<vmem>>, vector<16x1xf32>
    %5 = vector.broadcast %4 : vector<16x1xf32> to vector<16x128xf32>
    %6 = arith.addf %3, %5 : vector<16x128xf32>
    %cst_5 = arith.constant dense<0xFF800000> : vector<128xf32>
    %7 = vector.multi_reduction <maximumf>, %6, %cst_5 [0] : vector<16x128xf32> to vector<128xf32>
    %8 = vector.shape_cast %7 : vector<128xf32> to vector<1x128xf32>
    %9 = vector.broadcast %8 : vector<1x128xf32> to vector<16x128xf32>
    %10 = arith.subf %6, %9 : vector<16x128xf32>
    %11 = math.exp %10 : vector<16x128xf32>
    %cst_6 = arith.constant dense<0.000000e+00> : vector<128xf32>
    %12 = vector.multi_reduction <add>, %11, %cst_6 [0] : vector<16x128xf32> to vector<128xf32>
    %13 = vector.shape_cast %12 : vector<128xf32> to vector<1x128xf32>
    %cst_7 = arith.constant 1.000000e+00 : f32
    %14 = vector.broadcast %cst_7 : f32 to vector<1x128xf32>
    %15 = arith.divf %14, %13 : vector<1x128xf32>
    %c0_8 = arith.constant 0 : index
    %c0_9 = arith.constant 0 : index
    %16 = vector.load %arg4[%c0_8, %c0_9] : memref<8x16xf32, #tpu.memory_space<vmem>>, vector<8x16xf32>
    %cst_10 = arith.constant dense<0.000000e+00> : vector<8x128xf32>
    %17 = tpu.matmul %16, %11, %cst_10 {dimension_numbers = #tpu.dot_dimension_numbers<[1], [0], [0], [1], [0, 0, 1, 1], [], []>, precision = #tpu.contract_precision<fp32>} : vector<8x16xf32>, vector<16x128xf32>, vector<8x128xf32> -> vector<8x128xf32>
    %18 = vector.broadcast %15 : vector<1x128xf32> to vector<8x128xf32>
    %19 = arith.mulf %17, %18 : vector<8x128xf32>
    %20 = tpu.transpose %19, [1, 0] : vector<8x128xf32> -> vector<128x8xf32>
    %c0_11 = arith.constant 0 : index
    %c0_12 = arith.constant 0 : index
    %21 = vector.load %arg5[%c0_11, %c0_12] : memref<128x8xf32, #tpu.memory_space<vmem>>, vector<128x8xf32>
    tpu.vector_store %arg5[%c0_11, %c0_12], %20 {strides = array<i32>} : memref<128x8xf32, #tpu.memory_space<vmem>>, vector<128x8xf32>,
    return
  }
  func.func @transform_0(%arg0: i32) -> (i32, i32) {
    %c0_i32 = arith.constant 0 : i32
    %c0_i32_0 = arith.constant 0 : i32
    return %arg0, %c0_i32 : i32, i32
  }
  func.func @transform_1(%arg0: i32) -> (i32, i32) {
    %c0_i32 = arith.constant 0 : i32
    %c0_i32_0 = arith.constant 0 : i32
    %c0_i32_1 = arith.constant 0 : i32
    return %c0_i32, %c0_i32_0 : i32, i32
  }
  func.func @transform_2(%arg0: i32) -> (i32, i32) {
    %c0_i32 = arith.constant 0 : i32
    %c0_i32_0 = arith.constant 0 : i32
    %c0_i32_1 = arith.constant 0 : i32
    return %c0_i32, %c0_i32_0 : i32, i32
  }
  func.func @transform_3(%arg0: i32) -> (i32, i32) {
    %c0_i32 = arith.constant 0 : i32
    %c0_i32_0 = arith.constant 0 : i32
    %c0_i32_1 = arith.constant 0 : i32
    return %c0_i32, %c0_i32_0 : i32, i32
  }
  func.func @transform_4(%arg0: i32) -> (i32, i32) {
    %c0_i32 = arith.constant 0 : i32
    %c0_i32_0 = arith.constant 0 : i32
    return %arg0, %c0_i32 : i32, i32
  }
}

</mosaic_0001>

<bundles_post_ra>
// kernel: tpu_custom_call.1
= control target key start
LH: loop header
LB: loop body
LE: loop exit
PB: predicated region body
PF: predicated region fallthrough
CT: control target
= control target key end

     0   :  { %s2237_s15 = smov 0   ;;  %s2562_s0 = inlined_call_operand.vmem [shape: f32[256,8], index: 0, kind: input, shape index: {}]   ;;  %s2563_s1 = inlined_call_operand.vmem [shape: f32[16,8], index: 1, kind: input, shape index: {}]   ;;  %s2564_s2 = inlined_call_operand.vmem [shape: f32[16,1], index: 2, kind: input, shape index: {}]   ;;  %s2565_s3 = inlined_call_operand.vmem [shape: f32[8,16], index: 3, kind: input, shape index: {}]   ;;  %s2566_s4 = inlined_call_operand.vmem [shape: f32[256,8], index: 4, kind: output, shape index: {}]  }
   0x1 LB: > { %s1561_s16 = sadd.s32 4294967295, %s2206_s15   ;;  %p1565_p0 = scmp.ge.s32.totalorder %s2206_s15, 1  ;;  %s2206_s15 = sphi %s2237_s15, %s14_s15  }
   0x2   : > { %p163_p1 = scmp.lt.s32.totalorder %s2206_s15, 3 }
   0x4   : > { %p164_p2 = pnand %p1565_p0, %p163_p1 }
   0x5   : > { %s1566_s17 = sshll.u32 (!%p164_p2), %s1561_s16, 4  ;;  %vm231_vm0 = vcmask (!%p164_p2), 64512   ;;  %v217_v0 = vld [vmem:[%s2563_s1] sm:$0xff] (!%p164_p2)  ;;  %vm2210_vm1 = vmmov (!%p164_p2), 0   ;;  %vm993_vm2 = vcmask (!%p164_p2), 130048  }
   0x6   : > { %167 = sbr.rel (%p164_p2) target bundleno = 890 (0x37a), region = 36  ;;  %p190_p3 = scmp.lt.s32.totalorder (!%p164_p2), %s1566_s17, 31  ;;  %v233_v1 = vsel (!%p164_p2), %vm231_vm0, %v217_v0, 0 }
   0x7   : > { %v2249_v2 = vand.u32 (!%p164_p2), 4294901760, %v233_v1 }
   0x9   : > { %v2254_v3 = vsub.f32 (!%p164_p2), %v233_v1, %v2249_v2 }
   0xb   : > { %v369_v4 = vand.u32 (!%p164_p2), 4294901760, %v2254_v3 }
   0xd   : > { %s2568_s17 = smov (!%p190_p3, %s1566_s17), 31  ;;  %1835 = vmatprep.mubr.f32.mxu0 %v369_v4  ;;  %v370_v23 = vsub.f32 %v2254_v3, %v369_v4 }
   0xe   : > { %s1567_s20 = sshll.u32 %s2568_s17, 3 }
   0xf   : > { %s2262_s23 = scalar_lea.vmem %s2562_s0, %s1567_s20  ;;  %v371_v28 = vand.u32 4294901760, %v370_v23  ;;  %s2525_s8 = scalar_lea.vmem %s2566_s4, %s1567_s20 }
  0x10   : > { %v201_v5 = vld [vmem:[%s2262_s23] sm:$0xff]  ;;  %v202_v6 = vld [vmem:[%s2262_s23 + $0x8] sm:$0xff]  ;;  %v203_v7 = vld [vmem:[%s2262_s23 + $0x10] sm:$0xff] }
  0x11   : > { %v239_v8 = vsel %vm231_vm0, %v201_v5, 0  ;;  %v242_v9 = vsel %vm231_vm0, %v202_v6, 0  ;;  %v204_v10 = vld [vmem:[%s2262_s23 + $0x18] sm:$0xff]  ;;  %v245_v11 = vsel %vm231_vm0, %v203_v7, 0  ;;  %v205_v16 = vld [vmem:[%s2262_s23 + $0x20] sm:$0xff]  ;;  %v206_v17 = vld [vmem:[%s2262_s23 + $0x28] sm:$0xff]  ;;  %1730 = vmatprep.mubr.f32.mxu1 %v371_v28 }
  0x12   : > { %v287_v12 = vand.u32 4294901760, %v239_v8  ;;  %v290_v13 = vand.u32 4294901760, %v242_v9  ;;  %v248_v14 = vsel %vm231_vm0, %v204_v10, 0  ;;  %v293_v15 = vand.u32 4294901760, %v245_v11  ;;  %v207_v26 = vld [vmem:[%s2262_s23 + $0x30] sm:$0xff]  ;;  %v208_v27 = vld [vmem:[%s2262_s23 + $0x38] sm:$0xff] }
  0x13   : > { %v296_v18 = vand.u32 4294901760, %v248_v14  ;;  %v251_v21 = vsel %vm231_vm0, %v205_v16, 0  ;;  %v254_v22 = vsel %vm231_vm0, %v206_v17, 0  ;;  %v257_v30 = vsel %vm231_vm0, %v207_v26, 0  ;;  %v209_v34 = vld [vmem:[%s2262_s23 + $0x40] sm:$0xff]  ;;  %v210_v35 = vld [vmem:[%s2262_s23 + $0x48] sm:$0xff] }
  0x14   : > { %v2275_v19 = vpack.c.bf16 %v290_v13, %v287_v12  ;;  %v299_v24 = vand.u32 4294901760, %v251_v21  ;;  %v302_v25 = vand.u32 4294901760, %v254_v22  ;;  %v260_v31 = vsel %vm231_vm0, %v208_v27, 0  ;;  %v211_v41 = vld [vmem:[%s2262_s23 + $0x50] sm:$0xff]  ;;  %v212_v43 = vld [vmem:[%s2262_s23 + $0x58] sm:$0xff]  ;;  %v213_v63 = vld [vmem:[%s2262_s23 + $0x60] sm:$0xff] }
  0x15   : > { %v2277_v20 = vpack.c.bf16 %v296_v18, %v293_v15  ;;  %v305_v32 = vand.u32 4294901760, %v257_v30  ;;  %v308_v33 = vand.u32 4294901760, %v260_v31  ;;  %v263_v36 = vsel %vm231_vm0, %v209_v34, 0  ;;  %v214_v0 = vld [vmem:[%s2262_s23 + $0x68] sm:$0xff] }
  0x16   : > { %1951 = vmatprep.subr.bf16.mxu1 %v2275_v19  ;;  %2047 = vmatprep.subr.bf16.mxu0 %v2275_v19  ;;  %v2290_v29 = vpack.c.bf16 %v302_v25, %v299_v24  ;;  %v266_v37 = vsel %vm231_vm0, %v210_v35, 0  ;;  %v311_v39 = vand.u32 4294901760, %v263_v36  ;;  %v269_v44 = vsel %vm231_vm0, %v211_v41, 0 }
  0x17   : > { %1953 = vmatpush3.bf16.xpose.msra.mxu1 %v2275_v19  ;;  %2049 = vmatpush3.bf16.xpose.msra.mxu0 %v2275_v19  ;;  %v2302_v38 = vpack.c.bf16 %v308_v33, %v305_v32  ;;  %v314_v40 = vand.u32 4294901760, %v266_v37  ;;  %v2313_v45 = vsub.f32 %v239_v8, %v287_v12  ;;  %v2315_v46 = vsub.f32 %v242_v9, %v290_v13  ;;  %v216_v12 = vld [vmem:[%s2262_s23 + $0x78] sm:$0xff] }
  0x18   : > { %1955 = vmatprep.subr.bf16.mxu1 %v2277_v20  ;;  %2051 = vmatprep.subr.bf16.mxu0 %v2277_v20  ;;  %v2317_v47 = vsub.f32 %v245_v11, %v293_v15  ;;  %v2319_v48 = vsub.f32 %v248_v14, %v296_v18  ;;  %v2321_v49 = vsub.f32 %v251_v21, %v299_v24  ;;  %v272_v53 = vsel %vm231_vm0, %v212_v43, 0  ;;  %v215_v11 = vld [vmem:[%s2262_s23 + $0x70] sm:$0xff]  ;;  %v218_v14 = vld [vmem:[%s2563_s1 + $0x8] sm:$0xff] }
  0x19   : > { %v2309_v42 = vpack.c.bf16 %v314_v40, %v311_v39  ;;  %v2323_v50 = vsub.f32 %v254_v22, %v302_v25  ;;  %v2325_v51 = vsub.f32 %v257_v30, %v305_v32  ;;  %v2327_v52 = vsub.f32 %v260_v31, %v308_v33 }
  0x1a   : > { %v2330_v54 = vsub.f32 %v263_v36, %v311_v39  ;;  %v2332_v55 = vsub.f32 %v266_v37, %v314_v40  ;;  %v2336_v56 = vpack.c.bf16 %v2315_v46, %v2313_v45  ;;  %v2340_v57 = vpack.c.bf16 %v2319_v48, %v2317_v47 }
  0x1b   : > { %v2344_v58 = vpack.c.bf16 %v2323_v50, %v2321_v49  ;;  %v2348_v59 = vpack.c.bf16 %v2327_v52, %v2325_v51  ;;  %v317_v61 = vand.u32 4294901760, %v269_v44  ;;  %v320_v62 = vand.u32 4294901760, %v272_v53 }
  0x1c   : > { %v2354_v60 = vpack.c.bf16 %v2332_v55, %v2330_v54  ;;  %v275_v4 = vsel %vm231_vm0, %v213_v63, 0  ;;  %v278_v5 = vsel %vm231_vm0, %v214_v0, 0  ;;  %v281_v15 = vsel %vm231_vm0, %v215_v11, 0 }
  0x1d   : > { %v2360_v1 = vpack.c.bf16 %v320_v62, %v317_v61  ;;  %v2364_v6 = vsub.f32 %v269_v44, %v317_v61  ;;  %v2366_v7 = vsub.f32 %v272_v53, %v320_v62  ;;  %v323_v9 = vand.u32 4294901760, %v275_v4 }
  0x1e   : > { %v326_v10 = vand.u32 4294901760, %v278_v5  ;;  %v284_v16 = vsel %vm231_vm0, %v216_v12, 0  ;;  %v236_v21 = vsel %vm231_vm0, %v218_v14, 0  ;;  %v329_v23 = vand.u32 4294901760, %v281_v15 }
  0x1f   : > { %1957 = vmatpush3.bf16.xpose.msra.mxu1 %v2277_v20  ;;  %2053 = vmatpush3.bf16.xpose.msra.mxu0 %v2277_v20  ;;  %v2372_v8 = vpack.c.bf16 %v2366_v7, %v2364_v6  ;;  %v2385_v17 = vsub.f32 %v275_v4, %v323_v9  ;;  %v332_v24 = vand.u32 4294901760, %v284_v16  ;;  %v390_v25 = vand.u32 4294901760, %v2313_v45 }
  0x20   : > { %1959 = vmatprep.subr.bf16.mxu1 %v2290_v29  ;;  %2055 = vmatprep.subr.bf16.mxu0 %v2290_v29  ;;  %v2378_v13 = vpack.c.bf16 %v326_v10, %v323_v9  ;;  %v2387_v18 = vsub.f32 %v278_v5, %v326_v10  ;;  %v397_v26 = vand.u32 4294901760, %v2315_v46  ;;  %v2400_v27 = vand.u32 4294901760, %v236_v21 }
  0x21   : > { %v2402_v28 = vpack.c.bf16 %v332_v24, %v329_v23  ;;  %v391_v30 = vsub.f32 %v2313_v45, %v390_v25  ;;  %v2406_v32 = vsub.f32 %v281_v15, %v329_v23  ;;  %v2408_v33 = vsub.f32 %v284_v16, %v332_v24  ;;  %v219_v15 = vld [vmem:[%s2564_s2] sm:$0xff]  ;;  %v220_v24 = vld [vmem:[%s2564_s2 + $0x8] sm:$0xff] }
  0x22   : > { %v2394_v22 = vpack.c.bf16 %v2387_v18, %v2385_v17  ;;  %v398_v31 = vsub.f32 %v2315_v46, %v397_v26  ;;  %v2411_v34 = vsub.f32 %v236_v21, %v2400_v27  ;;  %v404_v39 = vand.u32 4294901760, %v2317_v47 }
  0x23   : > { %v2417_v35 = vpack.c.bf16 %v2408_v33, %v2406_v32  ;;  %v392_v36 = vand.u32 4294901760, %v391_v30  ;;  %v411_v40 = vand.u32 4294901760, %v2319_v48  ;;  %v2078_v44 = vpack.c.bf16 %v397_v26, %v390_v25 }
  0x24   : > { %v399_v37 = vand.u32 4294901760, %v398_v31  ;;  %v379_v41 = vand.u32 4294901760, %v2411_v34  ;;  %v405_v45 = vsub.f32 %v2317_v47, %v404_v39  ;;  %v418_v63 = vand.u32 4294901760, %v2321_v49 }
  0x25   : > { %v412_v46 = vsub.f32 %v2319_v48, %v411_v40  ;;  %v425_v0 = vand.u32 4294901760, %v2323_v50  ;;  %v2082_v9 = vpack.c.bf16 %v411_v40, %v404_v39  ;;  %v432_v12 = vand.u32 4294901760, %v2325_v51 }
  0x26   : > { %v1982_v43 = vpack.c.bf16 %v399_v37, %v392_v36  ;;  %v380_v53 = vsub.f32 %v2411_v34, %v379_v41  ;;  %v406_v61 = vand.u32 4294901760, %v405_v45  ;;  %v419_v47 = vsub.f32 %v2321_v49, %v418_v63 }
  0x27   : > { %1961 = vmatpush3.bf16.xpose.msra.mxu1 %v2290_v29  ;;  %2057 = vmatpush3.bf16.xpose.msra.mxu0 %v2290_v29  ;;  %v413_v62 = vand.u32 4294901760, %v412_v46  ;;  %v426_v48 = vsub.f32 %v2323_v50, %v425_v0  ;;  %v439_v14 = vand.u32 4294901760, %v2327_v52  ;;  %v2208_v49 = vmov 0  }
  0x28   : > { %1963 = vmatprep.subr.bf16.mxu1 %v2302_v38  ;;  %2059 = vmatprep.subr.bf16.mxu0 %v2302_v38  ;;  %v381_v4 = vand.u32 4294901760, %v380_v53  ;;  %v420_v10 = vand.u32 4294901760, %v419_v47  ;;  %v2086_v16 = vpack.c.bf16 %v425_v0, %v418_v63  ;;  %v433_v21 = vsub.f32 %v2325_v51, %v432_v12 }
  0x29   : > { %v1986_v5 = vpack.c.bf16 %v413_v62, %v406_v61  ;;  %v427_v11 = vand.u32 4294901760, %v426_v48  ;;  %2193 = vset.pattern.permute.xlu0 %v2208_v49  ;;  %v440_v23 = vsub.f32 %v2327_v52, %v439_v14  ;;  %v446_v30 = vand.u32 4294901760, %v2330_v54 }
  0x2a   : > { %223 = vperm.xlu0 %2193, %v219_v15   ;;  %v434_v25 = vand.u32 4294901760, %v433_v21  ;;  %v453_v31 = vand.u32 4294901760, %v2332_v55  ;;  %v2090_v37 = vpack.c.bf16 %v439_v14, %v432_v12  ;;  %v474_v61 = vand.u32 4294901760, %v2385_v17 }
  0x2b   : > { %v1990_v50 = vpack.c.bf16 %v427_v11, %v420_v10  ;;  %v441_v26 = vand.u32 4294901760, %v440_v23  ;;  %v447_v51 = vsub.f32 %v2330_v54, %v446_v30  ;;  %v481_v62 = vand.u32 4294901760, %v2387_v18 }
  0x2c   : > { %v454_v52 = vsub.f32 %v2332_v55, %v453_v31  ;;  %v2094_v45 = vpack.c.bf16 %v453_v31, %v446_v30  ;;  %v495_v47 = vand.u32 4294901760, %v2408_v33 }
  0x2d   : > { %v1994_v36 = vpack.c.bf16 %v441_v26, %v434_v25  ;;  %v448_v39 = vand.u32 4294901760, %v447_v51  ;;  %v2102_v10 = vpack.c.bf16 %v481_v62, %v474_v61 }
  0x2e   : > { %228 = vperm.xlu0 %2193, %v220_v24   ;;  %v455_v40 = vand.u32 4294901760, %v454_v52  ;;  %v496_v12 = vsub.f32 %v2408_v33, %v495_v47 }
  0x2f   : > { %1965 = vmatpush3.bf16.xpose.msra.mxu1 %v2302_v38  ;;  %2061 = vmatpush3.bf16.xpose.msra.mxu0 %v2302_v38 }
  0x30   : > { %1967 = vmatprep.subr.bf16.mxu1 %v2309_v42  ;;  %2063 = vmatprep.subr.bf16.mxu0 %v2309_v42 }
  0x37   : > { %1969 = vmatpush3.bf16.xpose.msra.mxu1 %v2309_v42  ;;  %2065 = vmatpush3.bf16.xpose.msra.mxu0 %v2309_v42 }
  0x38   : > { %1971 = vmatprep.subr.bf16.mxu1 %v2360_v1  ;;  %2067 = vmatprep.subr.bf16.mxu0 %v2360_v1 }
  0x3f   : > { %1973 = vmatpush3.bf16.xpose.msra.mxu1 %v2360_v1  ;;  %2069 = vmatpush3.bf16.xpose.msra.mxu0 %v2360_v1 }
  0x40   : > { %1975 = vmatprep.subr.bf16.mxu1 %v2378_v13  ;;  %2071 = vmatprep.subr.bf16.mxu0 %v2378_v13 }
  0x47   : > { %1977 = vmatpush3.bf16.xpose.msra.mxu1 %v2378_v13  ;;  %2073 = vmatpush3.bf16.xpose.msra.mxu0 %v2378_v13 }
  0x48   : > { %1979 = vmatprep.subr.bf16.mxu1 %v2402_v28  ;;  %2075 = vmatprep.subr.bf16.mxu0 %v2402_v28 }
  0x4f   : > { %1981 = vmatpush3.bf16.xpose.msra.mxu1 %v2402_v28  ;;  %2077 = vmatpush3.bf16.xpose.msra.mxu0 %v2402_v28 }
  0x50   : > { %1983 = vmatprep.subr.bf16.mxu1 %v1982_v43  ;;  %2079 = vmatprep.subr.bf16.mxu0 %v2078_v44 }
  0x56   : > { %1731 = vmatmul.mubr.f32.vlgmr.msra.gmra.mrb[0].mxu1 %v381_v4  ;;  %1836 = vmatmul.mubr.f32.vlgmr.msra.gmra.mrb[0].mxu0 %v379_v41  ;;  %v460_v41 = vand.u32 4294901760, %v2364_v6  ;;  %v475_v4 = vsub.f32 %v2385_v17, %v474_v61 }
  0x57   : > { %1985 = vmatpush3.bf16.xpose.msra.mxu1 %v1982_v43  ;;  %2081 = vmatpush3.bf16.xpose.msra.mxu0 %v2078_v44  ;;  %v467_v43 = vand.u32 4294901760, %v2366_v7  ;;  %v1998_v44 = vpack.c.bf16 %v455_v40, %v448_v39 }
  0x58   : > { %1987 = vmatprep.subr.bf16.mxu1 %v1986_v5  ;;  %2083 = vmatprep.subr.bf16.mxu0 %v2082_v9  ;;  %v461_v46 = vsub.f32 %v2364_v6, %v460_v41  ;;  %v476_v6 = vand.u32 4294901760, %v475_v4 }
  0x59   : > { %1765 = vmatprep.mubr.f32.mxu1 %v2249_v2  ;;  %1870 = vmatprep.mubr.f32.mxu0 %v2249_v2  ;;  %v468_v53 = vsub.f32 %v2366_v7, %v467_v43  ;;  %v2098_v0 = vpack.c.bf16 %v467_v43, %v460_v41 }
  0x5a   : > { %v462_v54 = vand.u32 4294901760, %v461_v46 }
  0x5b   : > { %v469_v55 = vand.u32 4294901760, %v468_v53 }
  0x5d   : > { %v2002_v63 = vpack.c.bf16 %v469_v55, %v462_v54 }
  0x5f   : > { %1989 = vmatpush3.bf16.xpose.msra.mxu1 %v1986_v5  ;;  %2085 = vmatpush3.bf16.xpose.msra.mxu0 %v2082_v9  ;;  %v482_v5 = vsub.f32 %v2387_v18, %v481_v62  ;;  %v488_v9 = vand.u32 4294901760, %v2406_v32  ;;  %v497_v18 = vand.u32 4294901760, %v496_v12 }
  0x60   : > { %1991 = vmatprep.subr.bf16.mxu1 %v1990_v50  ;;  %2087 = vmatprep.subr.bf16.mxu0 %v2086_v16 }
  0x61   : > { %v483_v7 = vand.u32 4294901760, %v482_v5  ;;  %v489_v11 = vsub.f32 %v2406_v32, %v488_v9  ;;  %v2106_v15 = vpack.c.bf16 %v495_v47, %v488_v9  ;;  %v992_v32 = vld [vmem:[%s2565_s3] sm:$0xff] }
  0x62   : > { %v995_v49 = vsel %vm993_vm2, %v992_v32, 0 }
  0x63   : > { %v2006_v48 = vpack.c.bf16 %v483_v7, %v476_v6  ;;  %v490_v17 = vand.u32 4294901760, %v489_v11  ;;  %v1064_v21 = vand.u32 4294901760, %v995_v49 }
  0x65   : > { %v2010_v14 = vpack.c.bf16 %v497_v18, %v490_v17  ;;  %v1065_v23 = vsub.f32 %v995_v49, %v1064_v21 }
  0x67   : > { %1993 = vmatpush3.bf16.xpose.msra.mxu1 %v1990_v50  ;;  %2089 = vmatpush3.bf16.xpose.msra.mxu0 %v2086_v16  ;;  %v1066_v24 = vand.u32 4294901760, %v1065_v23 }
  0x68   : > { %1995 = vmatprep.subr.bf16.mxu1 %v1994_v36  ;;  %2091 = vmatprep.subr.bf16.mxu0 %v2090_v37 }
  0x69   : > { %v1067_v31 = vsub.f32 %v1065_v23, %v1066_v24 }
  0x6b   : > { %v1068_v40 = vand.u32 4294901760, %v1067_v31 }
  0x6f   : > { %1997 = vmatpush3.bf16.xpose.msra.mxu1 %v1994_v36  ;;  %2093 = vmatpush3.bf16.xpose.msra.mxu0 %v2090_v37 }
  0x70   : > { %1999 = vmatprep.subr.bf16.mxu1 %v1998_v44  ;;  %2095 = vmatprep.subr.bf16.mxu0 %v2094_v45 }
  0x77   : > { %2001 = vmatpush3.bf16.xpose.msra.mxu1 %v1998_v44  ;;  %2097 = vmatpush3.bf16.xpose.msra.mxu0 %v2094_v45 }
  0x78   : > { %2003 = vmatprep.subr.bf16.mxu1 %v2002_v63  ;;  %2099 = vmatprep.subr.bf16.mxu0 %v2098_v0 }
  0x7f   : > { %2005 = vmatpush3.bf16.xpose.msra.mxu1 %v2002_v63  ;;  %2101 = vmatpush3.bf16.xpose.msra.mxu0 %v2098_v0 }
  0x80   : > { %2007 = vmatprep.subr.bf16.mxu1 %v2006_v48  ;;  %2103 = vmatprep.subr.bf16.mxu0 %v2102_v10 }
  0x87   : > { %2009 = vmatpush3.bf16.xpose.msra.mxu1 %v2006_v48  ;;  %2105 = vmatpush3.bf16.xpose.msra.mxu0 %v2102_v10 }
  0x88   : > { %2011 = vmatprep.subr.bf16.mxu1 %v2010_v14  ;;  %2107 = vmatprep.subr.bf16.mxu0 %v2106_v15 }
  0x8f   : > { %2013 = vmatpush3.bf16.xpose.msra.mxu1 %v2010_v14  ;;  %2109 = vmatpush3.bf16.xpose.msra.mxu0 %v2106_v15 }
  0x90   : > { %2015 = vmatprep.subr.bf16.mxu1 %v2336_v56  ;;  %2111 = vmatprep.subr.bf16.mxu0 %v2275_v19 }
  0x96   : > { %1766 = vmatmul.mubr.f32.vlgmr.msra.gmra.mrb[0].mxu1 %v2400_v27  ;;  %1871 = vmatmul.mubr.f32.vlgmr.msra.gmra.mrb[0].mxu0 %v2400_v27 }
  0x97   : > { %2017 = vmatpush3.bf16.xpose.msra.mxu1 %v2336_v56  ;;  %2113 = vmatpush3.bf16.xpose.msra.mxu0 %v2275_v19 }
  0x98   : > { %2019 = vmatprep.subr.bf16.mxu1 %v2340_v57  ;;  %2115 = vmatprep.subr.bf16.mxu0 %v2277_v20 }
  0x99   : > { %1800 = vmatprep.mubr.f32.mxu1 %v2254_v3  ;;  %1905 = vmatprep.mubr.f32.mxu0 %v2249_v2  ;;  %v2209_v2 = vmov 0.0|0.0   ;;  %v2211_v3 = vmov 0.0  }
  0x9f   : > { %2021 = vmatpush3.bf16.xpose.msra.mxu1 %v2340_v57  ;;  %2117 = vmatpush3.bf16.xpose.msra.mxu0 %v2277_v20 }
  0xa0   : > { %2023 = vmatprep.subr.bf16.mxu1 %v2344_v58  ;;  %2119 = vmatprep.subr.bf16.mxu0 %v2290_v29 }
  0xa7   : > { %2025 = vmatpush3.bf16.xpose.msra.mxu1 %v2344_v58  ;;  %2121 = vmatpush3.bf16.xpose.msra.mxu0 %v2290_v29 }
  0xa8   : > { %2027 = vmatprep.subr.bf16.mxu1 %v2348_v59  ;;  %2123 = vmatprep.subr.bf16.mxu0 %v2302_v38 }
  0xa9   : > { %v224_v19 = vpop.permute.xlu0 %223 }
  0xad   : > { %v229_v20 = vpop.permute.xlu0 %228 }
  0xaf   : > { %2029 = vmatpush3.bf16.xpose.msra.mxu1 %v2348_v59  ;;  %2125 = vmatpush3.bf16.xpose.msra.mxu0 %v2302_v38 }
  0xb0   : > { %2031 = vmatprep.subr.bf16.mxu1 %v2354_v60  ;;  %2127 = vmatprep.subr.bf16.mxu0 %v2309_v42 }
  0xb7   : > { %2033 = vmatpush3.bf16.xpose.msra.mxu1 %v2354_v60  ;;  %2129 = vmatpush3.bf16.xpose.msra.mxu0 %v2309_v42 }
  0xb8   : > { %2035 = vmatprep.subr.bf16.mxu1 %v2372_v8  ;;  %2131 = vmatprep.subr.bf16.mxu0 %v2360_v1 }
  0xbf   : > { %2037 = vmatpush3.bf16.xpose.msra.mxu1 %v2372_v8  ;;  %2133 = vmatpush3.bf16.xpose.msra.mxu0 %v2360_v1 }
  0xc0   : > { %2039 = vmatprep.subr.bf16.mxu1 %v2394_v22  ;;  %2135 = vmatprep.subr.bf16.mxu0 %v2378_v13 }
  0xc7   : > { %2041 = vmatpush3.bf16.xpose.msra.mxu1 %v2394_v22  ;;  %2137 = vmatpush3.bf16.xpose.msra.mxu0 %v2378_v13 }
  0xc8   : > { %2043 = vmatprep.subr.bf16.mxu1 %v2417_v35  ;;  %2139 = vmatprep.subr.bf16.mxu0 %v2402_v28 }
  0xcf   : > { %2045 = vmatpush3.bf16.xpose.msra.mxu1 %v2417_v35  ;;  %2141 = vmatpush3.bf16.xpose.msra.mxu0 %v2402_v28 }
  0xd0   : > { %2142 = vmatprep.subr.bf16.mxu0 %v2209_v2  ;;  %2151 = vmatprep.subr.bf16.mxu1 %v2209_v2 }
  0xd6   : > { %1801 = vmatmul.mubr.f32.vlgmr.msra.gmra.mrb[0].mxu1 %v2411_v34  ;;  %1906 = vmatmul.mubr.f32.vlgmr.msra.gmra.mrb[0].mxu0 %v2400_v27 }
  0xd7   : > { %1912 = vmatprep.mubr.msk.f32.mxu0 %vm2210_vm1, %v2211_v3  ;;  %1933 = vmatprep.mubr.msk.f32.mxu1 %vm2210_vm1, %v2211_v3 }
 0x1a9   : > { %v1802_v29 = vpop.f32.mrb[0].mxu1  ;;  %v1907_v38 = vpop.f32.mrb[0].mxu0 }
 0x1aa   : > { %v2160_v42 = vadd.f32 %v1802_v29, %v229_v20  ;;  %v644_v56 = vpop.f32.mrb[1].mxu1  ;;  %v960_v57 = vpop.f32.mrb[1].mxu0 }
 0x1ab   : > { %v2162_v58 = vadd.f32 %v644_v56, %v224_v19 }
 0x1ac   : > { %v2161_v59 = vadd.f32 %v2160_v42, %v1907_v38 }
 0x1ad   : > { %v2163_v60 = vadd.f32 %v2162_v58, %v960_v57 }
 0x1af   : > { %v970_v1 = vmax.f32 %v2163_v60, %v2161_v59 }
 0x1b1   : > { %v971_v8 = vrot.slane %v970_v1, 4 }
 0x1b3   : > { %v972_v13 = vmax.f32 %v970_v1, %v971_v8 }
 0x1b5   : > { %v973_v22 = vrot.slane %v972_v13, 2 }
 0x1b7   : > { %v974_v27 = vmax.f32 %v972_v13, %v973_v22 }
 0x1b9   : > { %v975_v28 = vrot.slane %v974_v27, 1 }
 0x1bb   : > { %v976_v33 = vmax.f32 %v974_v27, %v975_v28 }
 0x1bd   : > { %v977_v34 = vsub.f32 %v2163_v60, %v976_v33  ;;  %v978_v35 = vsub.f32 %v2161_v59, %v976_v33 }
 0x1bf   : > { %v979_v50 = vmul.f32 1.442695, %v977_v34  ;;  %v981_v16 = vmul.f32 1.442695, %v978_v35 }
 0x1c1   : > { %2194 = vpow2.f32 %v979_v50 }
 0x1c2   : > { %2196 = vpow2.f32 %v981_v16 }
 0x1cb   : > { %v2195_v25 = vpop.eup %2194 }
 0x1cc   : > { %v2197_v26 = vpop.eup %2196  ;;  %v998_v30 = vand.u32 4294901760, %v2195_v25 }
 0x1cd   : > { %v1001_v36 = vand.u32 4294901760, %v2197_v26  ;;  %v983_v37 = vadd.f32 %v2197_v26, %v2195_v25 }
 0x1ce   : > { %v1076_v51 = vsub.f32 %v2195_v25, %v998_v30 }
 0x1cf   : > { %v2143_v52 = vpack.c.bf16 %v1001_v36, %v998_v30  ;;  %v1083_v39 = vsub.f32 %v2197_v26, %v1001_v36  ;;  %v984_v62 = vrot.slane %v983_v37, 4 }
 0x1d0   : > { %v1077_v41 = vand.u32 4294901760, %v1076_v51 }
 0x1d1   : > { %2144 = vmatpush3.bf16.msra.mxu0 %v2143_v52  ;;  %2153 = vmatpush3.bf16.msra.mxu1 %v2143_v52  ;;  %v1084_v43 = vand.u32 4294901760, %v1083_v39  ;;  %v2149_v44 = vpack.c.bf16 %v1083_v39, %v1076_v51  ;;  %v985_v63 = vadd.f32 %v984_v62, %v983_v37 }
 0x1d2   : > { %2154 = vmatprep.subr.bf16.mxu1 %v2209_v2  ;;  %2145 = vmatprep.subr.bf16.mxu0 %v2209_v2  ;;  %v1078_v45 = vsub.f32 %v1076_v51, %v1077_v41 }
 0x1d3   : > { %v2155_v46 = vpack.c.bf16 %v1084_v43, %v1077_v41  ;;  %v1085_v53 = vsub.f32 %v1083_v39, %v1084_v43  ;;  %v986_v0 = vrot.slane %v985_v63, 2 }
 0x1d4   : > { %1913 = vmatmul.mubr.f32.vlgmr.msra.gmra.mrb[2].mxu0 %v1068_v40  ;;  %1934 = vmatmul.mubr.f32.vlgmr.msra.gmra.mrb[2].mxu1 %v1066_v24  ;;  %v1079_v54 = vand.u32 4294901760, %v1078_v45 }
 0x1d5   : > { %2156 = vmatpush3.bf16.msra.mxu1 %v2155_v46  ;;  %v1086_v55 = vand.u32 4294901760, %v1085_v53  ;;  %1919 = vmatprep.mubr.msk.f32.mxu0 %vm2210_vm1, %v2211_v3  ;;  %v987_v4 = vadd.f32 %v986_v0, %v985_v63 }
 0x1d6   : > { %1940 = vmatprep.mubr.msk.f32.mxu1 %vm2210_vm1, %v2211_v3  ;;  %2157 = vmatprep.subr.bf16.mxu1 %v2209_v2 }
 0x1d7   : > { %v2146_v61 = vpack.c.bf16 %v1086_v55, %v1079_v54  ;;  %v988_v5 = vrot.slane %v987_v4, 1 }
 0x1d9   : > { %2147 = vmatpush3.bf16.msra.mxu0 %v2146_v61  ;;  %v989_v6 = vadd.f32 %v988_v5, %v987_v4 }
 0x1da   : > { %2148 = vmatprep.subr.bf16.mxu0 %v2209_v2 }
 0x1db   : > { %2198 = vrcp.f32 %v989_v6 }
 0x1dc   : > { %1920 = vmatmul.mubr.f32.vlgmr.msra.gmra.mrb[2].mxu0 %v1064_v21  ;;  %1941 = vmatmul.mubr.f32.vlgmr.msra.gmra.mrb[2].mxu1 %v1064_v21 }
 0x1dd   : > { %2159 = vmatpush3.bf16.msra.mxu1 %v2143_v52  ;;  %2150 = vmatpush3.bf16.msra.mxu0 %v2149_v44 }
 0x1de   : > { %1926 = vmatprep.mubr.msk.f32.mxu0 %vm2210_vm1, %v2211_v3  ;;  %1947 = vmatprep.mubr.msk.f32.mxu1 %vm2210_vm1, %v2211_v3 }
 0x1e4   : > { %1927 = vmatmul.mubr.f32.vlgmr.msra.gmra.mrb[2].mxu0 %v1065_v23  ;;  %1948 = vmatmul.mubr.f32.vlgmr.msra.gmra.mrb[2].mxu1 %v1064_v21 }
 0x1e5   : > { %v2199_v11 = vpop.eup %2198 }
 0x2b7   : > { %v1227_v7 = vpop.f32.mrb[2].mxu0  ;;  %v1452_v9 = vpop.f32.mrb[2].mxu1 }
 0x2b8   : > { %v2164_v47 = vadd.f32 %v1452_v9, %v1227_v7  ;;  %v1928_v48 = vpop.f32.mrb[3].mxu0  ;;  %v1949_v10 = vpop.f32.mrb[3].mxu1 }
 0x2ba   : > { %v1456_v12 = vmul.f32 %v2199_v11, %v2164_v47 }
 0x2bc   : > { %1457 = vxpose.xlu1.b32.start.end [1/1] (short) %v1456_v12, 128 }
 0x33c   : > { %v1473_v17 = vpop.trf.xlu1 }
 0x33d   : > { %1489 = vst.msk [vmem:[%s2525_s8] sm:$0xff] %vm231_vm0, %v1473_v17 }
 0x340   : > { %v1474_v18 = vpop.trf.xlu1 }
 0x341   : > { %1490 = vst.msk [vmem:[%s2525_s8 + $0x8] sm:$0xff] %vm231_vm0, %v1474_v18 }
 0x344   : > { %v1475_v14 = vpop.trf.xlu1 }
 0x345   : > { %1491 = vst.msk [vmem:[%s2525_s8 + $0x10] sm:$0xff] %vm231_vm0, %v1475_v14 }
 0x348   : > { %v1476_v15 = vpop.trf.xlu1 }
 0x349   : > { %1492 = vst.msk [vmem:[%s2525_s8 + $0x18] sm:$0xff] %vm231_vm0, %v1476_v15 }
 0x34c   : > { %v1477_v2 = vpop.trf.xlu1 }
 0x34d   : > { %1493 = vst.msk [vmem:[%s2525_s8 + $0x20] sm:$0xff] %vm231_vm0, %v1477_v2 }
 0x350   : > { %v1478_v3 = vpop.trf.xlu1 }
 0x351   : > { %1494 = vst.msk [vmem:[%s2525_s8 + $0x28] sm:$0xff] %vm231_vm0, %v1478_v3 }
 0x354   : > { %v1479_v19 = vpop.trf.xlu1 }
 0x355   : > { %1495 = vst.msk [vmem:[%s2525_s8 + $0x30] sm:$0xff] %vm231_vm0, %v1479_v19 }
 0x358   : > { %v1480_v20 = vpop.trf.xlu1 }
 0x359   : > { %1496 = vst.msk [vmem:[%s2525_s8 + $0x38] sm:$0xff] %vm231_vm0, %v1480_v20 }
 0x35c   : > { %v1481_v29 = vpop.trf.xlu1 }
 0x35d   : > { %1497 = vst.msk [vmem:[%s2525_s8 + $0x40] sm:$0xff] %vm231_vm0, %v1481_v29 }
 0x360   : > { %v1482_v38 = vpop.trf.xlu1 }
 0x361   : > { %1498 = vst.msk [vmem:[%s2525_s8 + $0x48] sm:$0xff] %vm231_vm0, %v1482_v38 }
 0x364   : > { %v1483_v42 = vpop.trf.xlu1 }
 0x365   : > { %1499 = vst.msk [vmem:[%s2525_s8 + $0x50] sm:$0xff] %vm231_vm0, %v1483_v42 }
 0x368   : > { %v1484_v56 = vpop.trf.xlu1 }
 0x369   : > { %1500 = vst.msk [vmem:[%s2525_s8 + $0x58] sm:$0xff] %vm231_vm0, %v1484_v56 }
 0x36c   : > { %v1485_v57 = vpop.trf.xlu1 }
 0x36d   : > { %1501 = vst.msk [vmem:[%s2525_s8 + $0x60] sm:$0xff] %vm231_vm0, %v1485_v57 }
 0x370   : > { %v1486_v58 = vpop.trf.xlu1 }
 0x371   : > { %1502 = vst.msk [vmem:[%s2525_s8 + $0x68] sm:$0xff] %vm231_vm0, %v1486_v58 }
 0x374   : > { %v1487_v59 = vpop.trf.xlu1 }
 0x375   : > { %1503 = vst.msk [vmem:[%s2525_s8 + $0x70] sm:$0xff] %vm231_vm0, %v1487_v59 }
 0x378   : > { %v1488_v60 = vpop.trf.xlu1 }
 0x379   : > { %1504 = vst.msk [vmem:[%s2525_s8 + $0x78] sm:$0xff] %vm231_vm0, %v1488_v60 }
 0x37a PF: > { %s14_s15 = sadd.s32 1, %s2206_s15  }
 0x37b   : > { %p11_p4 = scmp.ge.s32.totalorder %s14_s15, 4  }
 0x37d   :  { %13 = sbr.rel (!%p11_p4) target bundleno = 1 (0x1), region = 66 }

</bundles_post_ra>
